<compile_context>
chip_gen: v5e
topology: v5e:2x2
jax: 0.10.0
libtpu: 0.0.40
codegen_flags: <defaults>
</compile_context>

<pallas_src>
import jax
import jax.numpy as jnp
from jax.experimental import pallas as pl
from jax.experimental.pallas import tpu as pltpu


def _rnd_kernel(x_ref, w1_ref, b1_ref, w2_ref, b2_ref, out_ref):
    """One grid step = one (net, batch-tile) pair.

    x:   [TB, IN]
    w1:  [1, IN,  HID]   b1: [1, 1, HID]
    w2:  [1, HID, OUT]   b2: [1, 1, OUT]
    out: [1, TB,  OUT]
    """
    x = x_ref[...]
    # First layer: tiny K=IN matmul on the MXU, f32 accumulation.
    h = jnp.dot(x, w1_ref[0], preferred_element_type=jnp.float32) + b1_ref[0]
    h = jnp.maximum(h, 0.0)  # ReLU (VPU)
    # Second layer.
    y = jnp.dot(h.astype(w2_ref.dtype), w2_ref[0],
                preferred_element_type=jnp.float32) + b2_ref[0]
    out_ref[0] = y.astype(out_ref.dtype)


def rnd_forward(params, x, *, tb_max=128):
    """Equivalent of RND.forward: returns (target_out, predictor_out).

    One fused Pallas kernel. Grid axis 0 = {target, predictor} (parallel,
    feeds both v7x TensorCores), grid axis 1 = batch tiles of <=128 rows.
    Per-net weights stay VMEM-resident across batch tiles.
    """
    w1, b1, w2, b2 = params["w1"], params["b1"], params["w2"], params["b2"]
    B, IN = x.shape
    HID = w1.shape[2]
    OUT = w2.shape[2]

    # tb must be a multiple of 8 (sublane) for the (8,128) block constraint.
    assert tb_max > 0 and tb_max % 8 == 0, "tb_max must be a positive multiple of 8"
    b_pad = ((B + 7) // 8) * 8
    tb = min(b_pad, tb_max)
    b_pad = ((b_pad + tb - 1) // tb) * tb
    x_p = x if b_pad == B else jnp.pad(x, ((0, b_pad - B), (0, 0)))

    nb = b_pad // tb
    grid = (2, nb)  # (net, batch-tile); net axis outermost so weights change only once

    in_specs = [
        # x: same batch tile reused by both nets (x is tiny: IN=24 f32/row).
        pl.BlockSpec((tb, IN), lambda n, b: (b, 0)),
        # Per-net weights/biases: constant in the batch axis -> VMEM-resident
        # across all batch tiles of a given net; each v7x core DMAs only its own net.
        pl.BlockSpec((1, IN, HID), lambda n, b: (n, 0, 0)),
        pl.BlockSpec((1, 1, HID), lambda n, b: (n, 0, 0)),
        pl.BlockSpec((1, HID, OUT), lambda n, b: (n, 0, 0)),
        pl.BlockSpec((1, 1, OUT), lambda n, b: (n, 0, 0)),
    ]
    # Single stacked, lane-dense (OUT multiple of 128) output stream.
    out_spec = pl.BlockSpec((1, tb, OUT), lambda n, b: (n, b, 0))

    out = pl.pallas_call(
        _rnd_kernel,
        out_shape=jax.ShapeDtypeStruct((2, b_pad, OUT), x.dtype),
        grid=grid,
        in_specs=in_specs,
        out_specs=out_spec,
        compiler_params=pltpu.CompilerParams(
            dimension_semantics=("parallel", "parallel"),
        ),
    )(x_p, w1, b1, w2, b2)

    if b_pad != B:
        return out[0, :B], out[1, :B]
    return out[0], out[1]


def rnd_init(key, input_size=24, hidden_size=256, output_size=256,
             param_dtype=jnp.float32):
    """Deterministic parameter construction mirroring RND.__init__.

    target (index 0)   : weights ~ N(0, 1), biases = 0 (frozen in PyTorch).
    predictor (index 1): deterministic uniform init (stand-in for PyTorch's
                         default kaiming-uniform Linear init), 1/sqrt(fan_in).

    Parameters are stacked along a leading net axis ONCE here (hoisted out of
    the forward path) and stored as [in, out] (PyTorch weight transposed).
    Pass param_dtype=jnp.bfloat16 for halved weight DMA / fewer MXU passes if
    bit-exact f32 parity with PyTorch is not required.
    """
    k = jax.random.split(key, 6)
    f32 = jnp.float32

    # target net: normal(0, 1) weights, zero bias
    t_w1 = jax.random.normal(k[0], (input_size, hidden_size), f32)
    t_b1 = jnp.zeros((1, hidden_size), f32)
    t_w2 = jax.random.normal(k[1], (hidden_size, output_size), f32)
    t_b2 = jnp.zeros((1, output_size), f32)

    # predictor net: uniform(-1/sqrt(fan_in), 1/sqrt(fan_in)) weights and biases
    lim1 = 1.0 / float(jnp.sqrt(jnp.float32(input_size)))
    lim2 = 1.0 / float(jnp.sqrt(jnp.float32(hidden_size)))
    p_w1 = jax.random.uniform(k[2], (input_size, hidden_size), f32, -lim1, lim1)
    p_b1 = jax.random.uniform(k[3], (1, hidden_size), f32, -lim1, lim1)
    p_w2 = jax.random.uniform(k[4], (hidden_size, output_size), f32, -lim2, lim2)
    p_b2 = jax.random.uniform(k[5], (1, output_size), f32, -lim2, lim2)

    return {
        "w1": jnp.stack([t_w1, p_w1]).astype(param_dtype),  # [2, IN,  HID]
        "b1": jnp.stack([t_b1, p_b1]).astype(param_dtype),  # [2, 1,   HID]
        "w2": jnp.stack([t_w2, p_w2]).astype(param_dtype),  # [2, HID, OUT]
        "b2": jnp.stack([t_b2, p_b2]).astype(param_dtype),  # [2, 1,   OUT]
    }


def _reference_forward(params, x):
    """Plain-JAX reference for correctness check."""
    def mlp(xv, w1, b1, w2, b2):
        h = jnp.maximum(xv @ w1 + b1, 0.0)
        return h @ w2 + b2
    xf = x.astype(jnp.float32)
    args_t = (params["w1"][0], params["b1"][0], params["w2"][0], params["b2"][0])
    args_p = (params["w1"][1], params["b1"][1], params["w2"][1], params["b2"][1])
    args_t = tuple(a.astype(jnp.float32) for a in args_t)
    args_p = tuple(a.astype(jnp.float32) for a in args_p)
    return mlp(xf, *args_t), mlp(xf, *args_p)


if __name__ == "__main__":
    key = jax.random.PRNGKey(0)
    k_param, k_x = jax.random.split(key)

    B, INPUT, HIDDEN, OUTPUT = 8, 24, 256, 256
    params = rnd_init(k_param, INPUT, HIDDEN, OUTPUT)
    x = jax.random.normal(k_x, (B, INPUT), jnp.float32)

    fwd = jax.jit(rnd_forward)
    target_out, predictor_out = fwd(params, x)
    jax.block_until_ready((target_out, predictor_out))

    ref_t, ref_p = _reference_forward(params, x)
    assert target_out.shape == (B, OUTPUT) and predictor_out.shape == (B, OUTPUT)
    assert jnp.allclose(target_out, ref_t, atol=1e-4, rtol=1e-4)
    assert jnp.allclose(predictor_out, ref_p, atol=1e-4, rtol=1e-4)

    print("KERNEL_OK")
</pallas_src>

<mosaic_0001>
module attributes {stable_mosaic.version = 11 : i64} {
  func.func @_rnd_kernel(%arg0: i32, %arg1: i32, %arg2: memref<8x24xf32, #tpu.memory_space<vmem>>, %arg3: memref<1x24x256xf32, #tpu.memory_space<vmem>>, %arg4: memref<1x1x256xf32, #tpu.memory_space<vmem>>, %arg5: memref<1x256x256xf32, #tpu.memory_space<vmem>>, %arg6: memref<1x1x256xf32, #tpu.memory_space<vmem>>, %arg7: memref<1x8x256xf32, #tpu.memory_space<vmem>>) attributes {dimension_semantics = [#tpu.dimension_semantics<parallel>, #tpu.dimension_semantics<parallel>], iteration_bounds = array<i64: 2, 1>, scalar_prefetch = 0 : i64, scratch_operands = 0 : i64, tpu.core_type = #tpu.core_type<tc>, window_params = [{transform_indices = @transform_0, window_bounds = array<i64: 8, 24>}, {transform_indices = @transform_1, window_bounds = array<i64: 1, 24, 256>}, {transform_indices = @transform_2, window_bounds = array<i64: 1, 1, 256>}, {transform_indices = @transform_3, window_bounds = array<i64: 1, 256, 256>}, {transform_indices = @transform_4, window_bounds = array<i64: 1, 1, 256>}, {transform_indices = @transform_5, window_bounds = array<i64: 1, 8, 256>}]} {
    %c0 = arith.constant 0 : index
    %c0_0 = arith.constant 0 : index
    %0 = vector.load %arg2[%c0, %c0_0] : memref<8x24xf32, #tpu.memory_space<vmem>>, vector<8x24xf32>
    %c0_1 = arith.constant 0 : index
    %c0_2 = arith.constant 0 : index
    %c0_3 = arith.constant 0 : index
    %1 = vector.load %arg3[%c0_1, %c0_2, %c0_3] : memref<1x24x256xf32, #tpu.memory_space<vmem>>, vector<1x24x256xf32>
    %2 = vector.shape_cast %1 : vector<1x24x256xf32> to vector<24x256xf32>
    %cst = arith.constant dense<0.000000e+00> : vector<8x256xf32>
    %3 = tpu.matmul %0, %2, %cst {dimension_numbers = #tpu.dot_dimension_numbers<[1], [0], [0], [1], [0, 0, 1, 1], [], []>} : vector<8x24xf32>, vector<24x256xf32>, vector<8x256xf32> -> vector<8x256xf32>
    %c0_4 = arith.constant 0 : index
    %c0_5 = arith.constant 0 : index
    %c0_6 = arith.constant 0 : index
    %4 = vector.load %arg4[%c0_4, %c0_5, %c0_6] : memref<1x1x256xf32, #tpu.memory_space<vmem>>, vector<1x1x256xf32>
    %5 = vector.shape_cast %4 : vector<1x1x256xf32> to vector<1x256xf32>
    %6 = vector.broadcast %5 : vector<1x256xf32> to vector<8x256xf32>
    %7 = arith.addf %3, %6 : vector<8x256xf32>
    %cst_7 = arith.constant 0.000000e+00 : f32
    %8 = vector.broadcast %cst_7 : f32 to vector<8x256xf32>
    %9 = arith.maximumf %7, %8 : vector<8x256xf32>
    %c0_8 = arith.constant 0 : index
    %c0_9 = arith.constant 0 : index
    %c0_10 = arith.constant 0 : index
    %10 = vector.load %arg5[%c0_8, %c0_9, %c0_10] : memref<1x256x256xf32, #tpu.memory_space<vmem>>, vector<1x256x256xf32>
    %11 = vector.shape_cast %10 : vector<1x256x256xf32> to vector<256x256xf32>
    %cst_11 = arith.constant dense<0.000000e+00> : vector<8x256xf32>
    %12 = tpu.matmul %9, %11, %cst_11 {dimension_numbers = #tpu.dot_dimension_numbers<[1], [0], [0], [1], [0, 0, 1, 1], [], []>} : vector<8x256xf32>, vector<256x256xf32>, vector<8x256xf32> -> vector<8x256xf32>
    %c0_12 = arith.constant 0 : index
    %c0_13 = arith.constant 0 : index
    %c0_14 = arith.constant 0 : index
    %13 = vector.load %arg6[%c0_12, %c0_13, %c0_14] : memref<1x1x256xf32, #tpu.memory_space<vmem>>, vector<1x1x256xf32>
    %14 = vector.shape_cast %13 : vector<1x1x256xf32> to vector<1x256xf32>
    %15 = vector.broadcast %14 : vector<1x256xf32> to vector<8x256xf32>
    %16 = arith.addf %12, %15 : vector<8x256xf32>
    %c0_15 = arith.constant 0 : index
    %c0_16 = arith.constant 0 : index
    %c0_17 = arith.constant 0 : index
    %17 = vector.load %arg7[%c0_15, %c0_16, %c0_17] : memref<1x8x256xf32, #tpu.memory_space<vmem>>, vector<1x8x256xf32>
    %18 = vector.shape_cast %17 : vector<1x8x256xf32> to vector<8x256xf32>
    %19 = vector.shape_cast %16 : vector<8x256xf32> to vector<1x8x256xf32>
    tpu.vector_store %arg7[%c0_15, %c0_16, %c0_17], %19 {strides = array<i32>} : memref<1x8x256xf32, #tpu.memory_space<vmem>>, vector<1x8x256xf32>,
    return
  }
  func.func @transform_0(%arg0: i32, %arg1: i32) -> (i32, i32) {
    %c0_i32 = arith.constant 0 : i32
    %c0_i32_0 = arith.constant 0 : i32
    return %arg1, %c0_i32 : i32, i32
  }
  func.func @transform_1(%arg0: i32, %arg1: i32) -> (i32, i32, i32) {
    %c0_i32 = arith.constant 0 : i32
    %c0_i32_0 = arith.constant 0 : i32
    %c0_i32_1 = arith.constant 0 : i32
    return %arg0, %c0_i32, %c0_i32_0 : i32, i32, i32
  }
  func.func @transform_2(%arg0: i32, %arg1: i32) -> (i32, i32, i32) {
    %c0_i32 = arith.constant 0 : i32
    %c0_i32_0 = arith.constant 0 : i32
    %c0_i32_1 = arith.constant 0 : i32
    return %arg0, %c0_i32, %c0_i32_0 : i32, i32, i32
  }
  func.func @transform_3(%arg0: i32, %arg1: i32) -> (i32, i32, i32) {
    %c0_i32 = arith.constant 0 : i32
    %c0_i32_0 = arith.constant 0 : i32
    %c0_i32_1 = arith.constant 0 : i32
    return %arg0, %c0_i32, %c0_i32_0 : i32, i32, i32
  }
  func.func @transform_4(%arg0: i32, %arg1: i32) -> (i32, i32, i32) {
    %c0_i32 = arith.constant 0 : i32
    %c0_i32_0 = arith.constant 0 : i32
    %c0_i32_1 = arith.constant 0 : i32
    return %arg0, %c0_i32, %c0_i32_0 : i32, i32, i32
  }
  func.func @transform_5(%arg0: i32, %arg1: i32) -> (i32, i32, i32) {
    %c0_i32 = arith.constant 0 : i32
    %c0_i32_0 = arith.constant 0 : i32
    return %arg0, %arg1, %c0_i32 : i32, i32, i32
  }
}

</mosaic_0001>

<bundles_post_ra>
// kernel: rnd_forward.1
= control target key start
LH: loop header
LB: loop body
LE: loop exit
PB: predicated region body
PF: predicated region fallthrough
CT: control target
= control target key end

     0   :  { %s1374_s0 = inlined_call_operand.hbm [shape: f32[8,24], index: 0, kind: input, shape index: {}]   ;;  %s1375_s1 = inlined_call_operand.hbm [shape: f32[2,24,256], index: 1, kind: input, shape index: {}]   ;;  %s1376_s2 = inlined_call_operand.hbm [shape: f32[2,1,256], index: 2, kind: input, shape index: {}]   ;;  %s1377_s3 = inlined_call_operand.hbm [shape: f32[2,256,256], index: 3, kind: input, shape index: {}]   ;;  %s1378_s4 = inlined_call_operand.hbm [shape: f32[2,1,256], index: 4, kind: input, shape index: {}]   ;;  %s1379_s5 = inlined_call_operand.vmem [shape: f32[2,8,256], index: 5, kind: output, shape index: {}]  }
   0x1   :  { %1382 = sst [smem:[#allocation14_spill]] %s1374_s0 }
   0x2   :  { %1383 = sst [smem:[#allocation15_spill]] %s1375_s1 }
   0x3   :  { %1384 = sst [smem:[#allocation16_spill]] %s1377_s3 }
   0x4   :  { %10 = vsyncpa [#allocation3], 0 }
   0x5   :  { %11 = vsyncpa [#allocation5], 0 }
   0x6   :  { %13 = vsyncpa [#allocation5 + $0x1], 0 }
   0x7   :  { %14 = vsyncpa [#allocation8], 0 }
   0x8   :  { %16 = vsyncpa [#allocation8 + $0x1], 0  ;;  %s1143_s18 = smov 0   ;;  %s1145_s19 = smov 0  }
   0x9   :  { %s1147_s20 = smov 0   ;;  %s1149_s21 = smov 0  }
   0xa   :  { %s1151_s22 = smov 0   ;;  %s1153_s23 = smov 0  }
   0xb LB: > { %s34_s24 = sadd.s32 1, %s1104_s22  ;;  %s67_s25 = sadd.s32 1, %s1096_s20  ;;  %s1108_s23 = sphi %s1153_s23, %s22_s23   ;;  %s1104_s22 = sphi %s1151_s22, %s1399_s22   ;;  %s1100_s21 = sphi %s1149_s21, %s1398_s21   ;;  %s1096_s20 = sphi %s1147_s20, %s1397_s20   ;;  %s1092_s19 = sphi %s1145_s19, %s1396_s19   ;;  %s1088_s18 = sphi %s1143_s18, %s1395_s18  }
   0xc   : > { %p36_p0 = scmp.ge.s32.totalorder %s34_s24, 2  ;;  %p74_p1 = scmp.ne.s32.totalorder %s1096_s20, %s1092_s19 }
   0xd   : > { %p75_p2 = scmp.eq.s32.totalorder %s1108_s23, 0  ;;  %p847_p4 = scmp.lt.s32.totalorder %s1108_s23, 2 }
   0xe   : > { %s1401_s24 = smov (%p36_p0, %s34_s24), 0  ;;  %s224_s27 = sand.u32 1, %s1108_s23  }
   0xf   : > { %1385 = sst [smem:[#allocation13_spill]] %s1401_s24  ;;  %p76_p3 = por %p75_p2, %p74_p1 }
  0x10   : > { %s64_s26 = ssub.s32 %s1104_s22, %s1401_s24  ;;  %s1185_s28 = sand.u32 1, %s1096_s20  }
  0x11   : > { %p65_p5 = scmp.eq.s32.totalorder %s64_s26, 0  ;;  %s815_s29 = smul.u32 48, %s1104_s22 }
  0x12   : > { %s814_s6 = smul.u32 48, %s1185_s28  ;;  %s1386_s1 = sld [smem:[#allocation15_spill]] }
  0x13   : > { %s1189_s30 = scalar_select %p65_p5, %s1096_s20, %s67_s25  }
  0x14   : > { %p1195_p6 = pnand %p847_p4, %p76_p3  ;;  %s228_s12 = scalar_lea.vmem [#allocation4], %s814_s6 }
  0x15   : > { %s236_s13 = sshll.u32 %s228_s12, 4  ;;  %s1199_s14 = scalar_lea.sflag [#allocation5], %s224_s27  ;;  %s237_s13 = int_to_ptr.vmem [resolvable:$true] %s236_s13 }
  0x16   : > { %s1110_s15 = smov 256   ;;  %s1111_s16 = smov 16  }
  0x17   : > { %s796_s17 = sshll.u32 %s1185_s28, 9  ;;  %s812_s25 = sshll.u32 %s1104_s22, 9 }
  0x18   : > { %s233_s9 = scalar_lea.hbm %s1386_s1, %s815_s29  ;;  %s1388_s3 = sld [smem:[#allocation16_spill]] }
  0x19   : > { %s234_s10 = sshll.u32 %s233_s9, 4  ;;  %s269_s8 = scalar_lea.vmem [#allocation7], %s796_s17  ;;  %s235_s10 = int_to_ptr.hbm [resolvable:$true] %s234_s10 }
  0x1a   : > { %836 = dma.hbm_to_vmem [thread:$0]  (!%p1195_p6), %s235_s10, 768, %s237_s13, %s1199_s14, %s1110_s15, %s1110_s15, %s1111_s16  }
  0x1b   : > { %s277_s9 = sshll.u32 %s269_s8, 4  ;;  %s1209_s12 = scalar_lea.sflag [#allocation8], %s224_s27  ;;  %s278_s9 = int_to_ptr.vmem [resolvable:$true] %s277_s9 }
  0x1c   : > { %s1380_s1 = sadd.s32 4294967295, %s1108_s23   ;;  %p80_p7 = scmp.ne.s32.totalorder %s1092_s19, %s1088_s18 }
  0x1d   : > { %p1219_p8 = scmp.eq.s32.totalorder %s1380_s1, 0  ;;  %p790_p9 = scmp.ge.s32.totalorder %s1108_s23, 1 }
  0x1e   : > { %s274_s6 = scalar_lea.hbm %s1388_s3, %s812_s25  ;;  %p197_p10 = scmp.lt.s32.totalorder %s1108_s23, 3 }
  0x1f   : > { %s275_s7 = sshll.u32 %s274_s6, 4  ;;  %p1227_p11 = por %p1219_p8, %p80_p7  ;;  %s276_s7 = int_to_ptr.hbm [resolvable:$true] %s275_s7 }
  0x20   : > { %842 = dma.hbm_to_vmem [thread:$0]  (!%p1195_p6), %s276_s7, 8192, %s278_s9, %s1209_s12, %s1110_s15, %s1110_s15, %s1111_s16  }
  0x21   : > { %s1391_s0 = sld [smem:[#allocation14_spill]]  ;;  %p1234_p12 = pnand %p790_p9, %p197_p10 }
  0x22   : > { %s794_s16 = sshll.u32 %s1185_s28, 1  ;;  %s1112_s25 = smov [#allocation2]  }
  0x23   : > { %p829_p13 = pneg %p1234_p12  ;;  %s213_s26 = sshll.u32 %s1112_s25, 4  ;;  %s214_s26 = int_to_ptr.vmem [resolvable:$true] %s213_s26 }
  0x24   : > { %s795_s29 = sshll.u32 %s1104_s22, 1  ;;  %s250_s9 = scalar_lea.vmem [#allocation6], %s794_s16 }
  0x25   : > { %p830_p0 = pnand %p829_p13, %p1219_p8  ;;  %s254_s8 = scalar_lea.hbm %s1376_s2, %s795_s29 }
  0x26   : > { %s258_s27 = sshll.u32 %s250_s9, 4  ;;  %s256_s17 = sshll.u32 %s254_s8, 4  ;;  %s257_s17 = int_to_ptr.hbm [resolvable:$true] %s256_s17  ;;  %s259_s27 = int_to_ptr.vmem [resolvable:$true] %s258_s27 }
  0x27   : > { %s211_s15 = sshll.u32 %s1391_s0, 4  ;;  %s295_s1 = scalar_lea.hbm %s1378_s4, %s795_s29  ;;  %s212_s15 = int_to_ptr.hbm [resolvable:$true] %s211_s15 }
  0x28   : > { %832 = dma.hbm_to_vmem [thread:$0]  (!%p830_p0), %s212_s15, 128, %s214_s26, [#allocation3]  }
  0x29   : > { %839 = dma.hbm_to_vmem [thread:$0]  (!%p1195_p6), %s257_s17, 32, %s259_s27, %s1199_s14  }
  0x2a   : > { %s297_s0 = sshll.u32 %s295_s1, 4  ;;  %s291_s3 = scalar_lea.vmem [#allocation9], %s794_s16  ;;  %s298_s0 = int_to_ptr.hbm [resolvable:$true] %s297_s0 }
  0x2b   : > { %s299_s24 = sshll.u32 %s291_s3, 4  ;;  %308 = sbr.rel (%p1234_p12) target bundleno = 332 (0x14c), region = 40  ;;  %s300_s24 = int_to_ptr.vmem [resolvable:$true] %s299_s24 }
  0x2c   : > { %845 = dma.hbm_to_vmem [thread:$0]  (!%p1195_p6), %s298_s0, 32, %s300_s24, %s1209_s12  }
  0x30   : > { %1075 = dma.done.wait (%p1219_p8), [#allocation3], 128  }
  0x31   : > { %1077 = vsyncadd (%p1219_p8), [#allocation3], 4294967168  ;;  %s1393_s14 = sadd.s32 4294967295, %s1108_s23   ;;  %s1265_s15 = sand.u32 1, %s1092_s19  }
  0x32   : > { %s315_s1 = sand.u32 1, %s1393_s14   ;;  %s816_s3 = smul.u32 48, %s1265_s15 }
  0x33   : > { %s316_s11 = scalar_lea.sflag [#allocation5], %s315_s1 }
  0x34   : > { %s319_s0 = scalar_lea.vmem [#allocation4], %s816_s3 }
  0x35   : > { %1079 = dma.done.wait (%p1227_p11), %s316_s11, 800  }
  0x36   : > { %1081 = vsyncadd (%p1227_p11), %s316_s11, 4294966496  ;;  %s803_s24 = sshll.u32 %s1265_s15, 1  ;;  %s804_s12 = sshll.u32 %s1265_s15, 9 }
  0x37   : > { %s1276_s10 = scalar_lea.vmem [#allocation6], %s803_s24  ;;  %s336_s18 = scalar_lea.sflag [#allocation8], %s315_s1 }
  0x38   : > { %s1278_s16 = scalar_lea.vmem [#allocation7], %s804_s12 }
  0x39   : > { %1083 = dma.done.wait (%p1227_p11), %s336_s18, 8224  }
  0x3a   : > { %1085 = vsyncadd (%p1227_p11), %s336_s18, 4294959072  ;;  %v410_v0 = vld [vmem:[%s319_s0 + $0x20] sm:$0xff]  ;;  %v408_v1 = vld [vmem:[%s319_s0 + $0x10] sm:$0xff]  ;;  %vm418_vm0 = vcmask 195584   ;;  %p396_p1 = scmp.lt.s32.totalorder %s1100_s21, 1  ;;  %s349_s13 = scalar_lea.vmem [#allocation9], %s803_s24 }
  0x3b   : > { %v411_v2 = vld [vmem:[%s319_s0 + $0x28] sm:$0xff]  ;;  %435 = vmatpush.msra.mxu0 %v410_v0  ;;  %v409_v3 = vld [vmem:[%s319_s0 + $0x18] sm:$0xff]  ;;  %v406_v4 = vld [vmem:[%s319_s0] sm:$0xff] }
  0x3c   : > { %455 = vmatpush.msra.mxu1 %v411_v2  ;;  %v407_v5 = vld [vmem:[%s319_s0 + $0x8] sm:$0xff]  ;;  %s1403_s21 = smov (!%p396_p1, %s1100_s21), 1 }
  0x3d   : > { %v494_v6 = vld [vmem:[%s1278_s16 + $0xf0] sm:$0xff]  ;;  %436 = vmatpush.msra.mxu0 %v408_v1  ;;  %v495_v9 = vld [vmem:[%s1278_s16 + $0xf8] sm:$0xff]  ;;  %v492_v10 = vld [vmem:[%s1278_s16 + $0xe0] sm:$0xff]  ;;  %s813_s26 = sshll.u32 %s1403_s21, 4 }
  0x3e   : > { %456 = vmatpush.msra.mxu1 %v409_v3  ;;  %v405_v7 = vld [vmem:[#allocation2] sm:$0xff]  ;;  %534 = vmatpush.msra.mxu2 %v494_v6  ;;  %v524_v12 = vld [vmem:[%s1278_s16 + $0x1e0] sm:$0xff]  ;;  %v493_v13 = vld [vmem:[%s1278_s16 + $0xe8] sm:$0xff]  ;;  %s404_s7 = scalar_lea.vmem %s1379_s5, %s813_s26 }
  0x3f   : > { %v526_v8 = vld [vmem:[%s1278_s16 + $0x1f0] sm:$0xff]  ;;  %437 = vmatpush.msra.mxu0 %v406_v4  ;;  %v527_v11 = vld [vmem:[%s1278_s16 + $0x1f8] sm:$0xff]  ;;  %v525_v15 = vld [vmem:[%s1278_s16 + $0x1e8] sm:$0xff] }
  0x40   : > { %554 = vmatpush.msra.mxu3 %v526_v8  ;;  %457 = vmatpush.msra.mxu1 %v407_v5  ;;  %v490_v14 = vld [vmem:[%s1278_s16 + $0xd0] sm:$0xff]  ;;  %v491_v17 = vld [vmem:[%s1278_s16 + $0xd8] sm:$0xff]  ;;  %v488_v18 = vld [vmem:[%s1278_s16 + $0xc0] sm:$0xff] }
  0x41   : > { %808 = vmatmul.msk.f32.vlgmr.msra.gmra.mxu0 %vm418_vm0, %v405_v7  ;;  %809 = vmatmul.msk.f32.vlgmr.msra.gmra.mxu1 %vm418_vm0, %v405_v7  ;;  %v522_v16 = vld [vmem:[%s1278_s16 + $0x1d0] sm:$0xff]  ;;  %v523_v19 = vld [vmem:[%s1278_s16 + $0x1d8] sm:$0xff]  ;;  %v520_v20 = vld [vmem:[%s1278_s16 + $0x1c0] sm:$0xff] }
  0x42   : > { %574 = vmatpush.msrb.mxu0 %v495_v9  ;;  %535 = vmatpush.msra.mxu2 %v492_v10  ;;  %v489_v21 = vld [vmem:[%s1278_s16 + $0xc8] sm:$0xff]  ;;  %v486_v22 = vld [vmem:[%s1278_s16 + $0xb0] sm:$0xff]  ;;  %v487_v25 = vld [vmem:[%s1278_s16 + $0xb8] sm:$0xff] }
  0x43   : > { %594 = vmatpush.msrb.mxu1 %v527_v11  ;;  %555 = vmatpush.msra.mxu3 %v524_v12  ;;  %v521_v23 = vld [vmem:[%s1278_s16 + $0x1c8] sm:$0xff]  ;;  %v518_v24 = vld [vmem:[%s1278_s16 + $0x1b0] sm:$0xff]  ;;  %v484_v26 = vld [vmem:[%s1278_s16 + $0xa0] sm:$0xff] }
  0x44   : > { %575 = vmatpush.msrb.mxu0 %v493_v13  ;;  %536 = vmatpush.msra.mxu2 %v490_v14  ;;  %v519_v27 = vld [vmem:[%s1278_s16 + $0x1b8] sm:$0xff]  ;;  %v516_v28 = vld [vmem:[%s1278_s16 + $0x1a0] sm:$0xff]  ;;  %v485_v29 = vld [vmem:[%s1278_s16 + $0xa8] sm:$0xff] }
  0x45   : > { %595 = vmatpush.msrb.mxu1 %v525_v15  ;;  %556 = vmatpush.msra.mxu3 %v522_v16  ;;  %v482_v30 = vld [vmem:[%s1278_s16 + $0x90] sm:$0xff]  ;;  %v517_v31 = vld [vmem:[%s1278_s16 + $0x1a8] sm:$0xff]  ;;  %v483_v33 = vld [vmem:[%s1278_s16 + $0x98] sm:$0xff] }
  0x46   : > { %576 = vmatpush.msrb.mxu0 %v491_v17  ;;  %537 = vmatpush.msra.mxu2 %v488_v18  ;;  %v514_v32 = vld [vmem:[%s1278_s16 + $0x190] sm:$0xff]  ;;  %v480_v34 = vld [vmem:[%s1278_s16 + $0x80] sm:$0xff]  ;;  %v515_v35 = vld [vmem:[%s1278_s16 + $0x198] sm:$0xff] }
  0x47   : > { %596 = vmatpush.msrb.mxu1 %v523_v19  ;;  %557 = vmatpush.msra.mxu3 %v520_v20  ;;  %v512_v36 = vld [vmem:[%s1278_s16 + $0x180] sm:$0xff]  ;;  %v481_v37 = vld [vmem:[%s1278_s16 + $0x88] sm:$0xff]  ;;  %v478_v38 = vld [vmem:[%s1278_s16 + $0x70] sm:$0xff] }
  0x48   : > { %577 = vmatpush.msrb.mxu0 %v489_v21  ;;  %538 = vmatpush.msra.mxu2 %v486_v22  ;;  %v513_v39 = vld [vmem:[%s1278_s16 + $0x188] sm:$0xff]  ;;  %v510_v40 = vld [vmem:[%s1278_s16 + $0x170] sm:$0xff]  ;;  %v479_v41 = vld [vmem:[%s1278_s16 + $0x78] sm:$0xff] }
  0x49   : > { %597 = vmatpush.msrb.mxu1 %v521_v23  ;;  %558 = vmatpush.msra.mxu3 %v518_v24  ;;  %v476_v42 = vld [vmem:[%s1278_s16 + $0x60] sm:$0xff]  ;;  %v511_v43 = vld [vmem:[%s1278_s16 + $0x178] sm:$0xff]  ;;  %v477_v45 = vld [vmem:[%s1278_s16 + $0x68] sm:$0xff] }
  0x4a   : > { %578 = vmatpush.msrb.mxu0 %v487_v25  ;;  %539 = vmatpush.msra.mxu2 %v484_v26  ;;  %v508_v44 = vld [vmem:[%s1278_s16 + $0x160] sm:$0xff]  ;;  %v474_v46 = vld [vmem:[%s1278_s16 + $0x50] sm:$0xff]  ;;  %v509_v47 = vld [vmem:[%s1278_s16 + $0x168] sm:$0xff] }
  0x4b   : > { %598 = vmatpush.msrb.mxu1 %v519_v27  ;;  %559 = vmatpush.msra.mxu3 %v516_v28  ;;  %v506_v48 = vld [vmem:[%s1278_s16 + $0x150] sm:$0xff]  ;;  %v475_v49 = vld [vmem:[%s1278_s16 + $0x58] sm:$0xff]  ;;  %v472_v50 = vld [vmem:[%s1278_s16 + $0x40] sm:$0xff] }
  0x4c   : > { %579 = vmatpush.msrb.mxu0 %v485_v29  ;;  %540 = vmatpush.msra.mxu2 %v482_v30  ;;  %v507_v51 = vld [vmem:[%s1278_s16 + $0x158] sm:$0xff]  ;;  %v504_v52 = vld [vmem:[%s1278_s16 + $0x140] sm:$0xff]  ;;  %v473_v53 = vld [vmem:[%s1278_s16 + $0x48] sm:$0xff] }
  0x4d   : > { %599 = vmatpush.msrb.mxu1 %v517_v31  ;;  %560 = vmatpush.msra.mxu3 %v514_v32  ;;  %v470_v54 = vld [vmem:[%s1278_s16 + $0x30] sm:$0xff]  ;;  %v505_v55 = vld [vmem:[%s1278_s16 + $0x148] sm:$0xff]  ;;  %v471_v56 = vld [vmem:[%s1278_s16 + $0x38] sm:$0xff] }
  0x4e   : > { %580 = vmatpush.msrb.mxu0 %v483_v33  ;;  %541 = vmatpush.msra.mxu2 %v480_v34  ;;  %v468_v57 = vld [vmem:[%s1278_s16 + $0x20] sm:$0xff]  ;;  %v502_v58 = vld [vmem:[%s1278_s16 + $0x130] sm:$0xff]  ;;  %v469_v59 = vld [vmem:[%s1278_s16 + $0x28] sm:$0xff] }
  0x4f   : > { %600 = vmatpush.msrb.mxu1 %v515_v35  ;;  %561 = vmatpush.msra.mxu3 %v512_v36  ;;  %v503_v60 = vld [vmem:[%s1278_s16 + $0x138] sm:$0xff]  ;;  %v466_v61 = vld [vmem:[%s1278_s16 + $0x10] sm:$0xff]  ;;  %v500_v62 = vld [vmem:[%s1278_s16 + $0x120] sm:$0xff] }
  0x50   : > { %581 = vmatpush.msrb.mxu0 %v481_v37  ;;  %542 = vmatpush.msra.mxu2 %v478_v38  ;;  %v467_v63 = vld [vmem:[%s1278_s16 + $0x18] sm:$0xff]  ;;  %v501_v0 = vld [vmem:[%s1278_s16 + $0x128] sm:$0xff]  ;;  %v464_v1 = vld [vmem:[%s1278_s16] sm:$0xff] }
  0x51   : > { %601 = vmatpush.msrb.mxu1 %v513_v39  ;;  %562 = vmatpush.msra.mxu3 %v510_v40  ;;  %v498_v2 = vld [vmem:[%s1278_s16 + $0x110] sm:$0xff]  ;;  %v465_v3 = vld [vmem:[%s1278_s16 + $0x8] sm:$0xff]  ;;  %v499_v4 = vld [vmem:[%s1278_s16 + $0x118] sm:$0xff] }
  0x52   : > { %582 = vmatpush.msrb.mxu0 %v479_v41  ;;  %543 = vmatpush.msra.mxu2 %v476_v42  ;;  %v496_v5 = vld [vmem:[%s1278_s16 + $0x100] sm:$0xff]  ;;  %v497_v6 = vld [vmem:[%s1278_s16 + $0x108] sm:$0xff]  ;;  %v412_v7 = vld [vmem:[%s1276_s10] sm:$0x3] }
  0x53   : > { %602 = vmatpush.msrb.mxu1 %v511_v43  ;;  %563 = vmatpush.msra.mxu3 %v508_v44  ;;  %v414_v8 = vperm.slane %v412_v7, 0  ;;  %v415_v9 = vperm.slane %v412_v7, 1  ;;  %v528_v16 = vld [vmem:[%s349_s13] sm:$0x3] }
  0x54   : > { %583 = vmatpush.msrb.mxu0 %v477_v45  ;;  %544 = vmatpush.msra.mxu2 %v474_v46  ;;  %v531_v17 = vperm.slane %v528_v16, 1  ;;  %v530_v22 = vperm.slane %v528_v16, 0 }
  0x55   : > { %603 = vmatpush.msrb.mxu1 %v509_v47  ;;  %564 = vmatpush.msra.mxu3 %v506_v48 }
  0x56   : > { %584 = vmatpush.msrb.mxu0 %v475_v49  ;;  %545 = vmatpush.msra.mxu2 %v472_v50 }
  0x57   : > { %604 = vmatpush.msrb.mxu1 %v507_v51  ;;  %565 = vmatpush.msra.mxu3 %v504_v52 }
  0x58   : > { %585 = vmatpush.msrb.mxu0 %v473_v53  ;;  %546 = vmatpush.msra.mxu2 %v470_v54 }
  0x59   : > { %605 = vmatpush.msrb.mxu1 %v505_v55  ;;  %566 = vmatpush.msra.mxu3 %v502_v58 }
  0x5a   : > { %586 = vmatpush.msrb.mxu0 %v471_v56  ;;  %547 = vmatpush.msra.mxu2 %v468_v57 }
  0x5b   : > { %606 = vmatpush.msrb.mxu1 %v503_v60  ;;  %567 = vmatpush.msra.mxu3 %v500_v62 }
  0x5c   : > { %587 = vmatpush.msrb.mxu0 %v469_v59  ;;  %548 = vmatpush.msra.mxu2 %v466_v61 }
  0x5d   : > { %607 = vmatpush.msrb.mxu1 %v501_v0  ;;  %568 = vmatpush.msra.mxu3 %v498_v2 }
  0x5e   : > { %588 = vmatpush.msrb.mxu0 %v467_v63  ;;  %549 = vmatpush.msra.mxu2 %v464_v1 }
  0x5f   : > { %608 = vmatpush.msrb.mxu1 %v499_v4  ;;  %569 = vmatpush.msra.mxu3 %v496_v5 }
  0x60   : > { %589 = vmatpush.msrb.mxu0 %v465_v3 }
  0x61   : > { %609 = vmatpush.msrb.mxu1 %v497_v6 }
  0xbe   : > { %v439_v10 = vpop.f32.mrf.mxu0  ;;  %v459_v11 = vpop.f32.mrf.mxu1 }
  0xbf   : > { %v440_v12 = vadd.f32 %v439_v10, %v414_v8  ;;  %v460_v13 = vadd.f32 %v459_v11, %v415_v9 }
  0xc1   : > { %v462_v14 = vmax.f32 %v440_v12, 0.0  ;;  %v463_v15 = vmax.f32 %v460_v13, 0.0 }
  0xc3   : > { %550 = vmatmul.f32.vlgmr.msra.gmra.mxu2 %v462_v14  ;;  %590 = vmatmul.f32.vlgmr.msrb.gmra.mxu0 %v462_v14 }
  0xc4   : > { %570 = vmatmul.f32.vlgmr.msra.gmra.mxu3 %v463_v15  ;;  %610 = vmatmul.f32.vlgmr.msrb.gmra.mxu1 %v463_v15 }
 0x140   : > { %v591_v18 = vpop.f32.mrf.mxu0 }
 0x141   : > { %v592_v19 = vadd.f32 %v591_v18, %v531_v17  ;;  %v611_v20 = vpop.f32.mrf.mxu1 }
 0x143   : > { %v612_v21 = vadd.f32 %v611_v20, %v592_v19 }
 0x145   : > { %615 = vst [vmem:[%s404_s7 + $0x8] sm:$0xff] %v612_v21 }
 0x146   : > { %v551_v23 = vpop.f32.mrf.mxu2 }
 0x147   : > { %v552_v24 = vadd.f32 %v551_v23, %v530_v22  ;;  %v571_v25 = vpop.f32.mrf.mxu3 }
 0x149   : > { %v572_v26 = vadd.f32 %v571_v25, %v552_v24 }
 0x14b   : > { %614 = vst [vmem:[%s404_s7] sm:$0xff] %v572_v26 }
 0x14c PF: > { %s22_s23 = sadd.s32 1, %s1108_s23   ;;  %s1394_s8 = sld [smem:[#allocation13_spill]] }
 0x14d   : > { %p19_p2 = scmp.ge.s32.totalorder %s22_s23, 4   ;;  %s1395_s18 = smov %s1092_s19 }
 0x14e   : > { %s1396_s19 = smov %s1096_s20  ;;  %s1397_s20 = smov %s1189_s30 }
 0x14f   : > { %s1398_s21 = smov %s1104_s22  ;;  %21 = sbr.rel (!%p19_p2) target bundleno = 11 (0xb), region = 121 }
 0x152   : > { %s1399_s22 = smov %s1394_s8 }
 0x154   :  { %645 = vsyncpa [#allocation3], 1 }
 0x155   :  { %647 = vsyncpa [#allocation3 + $0x1], 1 }
 0x156   :  { %648 = vsyncpa [#allocation5], 1 }
 0x157   :  { %650 = vsyncpa [#allocation5 + $0x1], 1 }
 0x158   :  { %651 = vsyncpa [#allocation8], 1 }
 0x159   :  { %653 = vsyncpa [#allocation8 + $0x1], 1 }

</bundles_post_ra>
